<compile_context>
chip_gen: v7x
topology: tpu7x:2x2x1
jax: 0.10.0
libtpu: 0.0.40
codegen_flags: <defaults>
</compile_context>

<pallas_src>
import functools

import jax
import jax.numpy as jnp
from jax import lax
from jax.experimental import pallas as pl
from jax.experimental.pallas import tpu as pltpu

T_DISK = 1.25  # threshold used by CC_layer.build_kernel


def build_disk_kernel_2d(d0, d1):
    """CC_layer.build_kernel for dim=2: binary ellipse of shape (2*d0+1, 2*d1+1)."""
    wy, wx = 2 * d0 + 1, 2 * d1 + 1
    yy = jnp.arange(wy, dtype=jnp.float32) - (wy // 2)
    xx = jnp.arange(wx, dtype=jnp.float32) - (wx // 2)
    YY, XX = jnp.meshgrid(yy, xx, indexing="ij")
    return (((XX / d1) ** 2 + (YY / d0) ** 2) < T_DISK).astype(jnp.float32)


def conv_as_matmul_matrix(k2d, H, W):
    """(H*W, H*W) matrix M such that flat(conv2d_same_zeropad(x, k2d)) == flat(x) @ M."""
    kh, kw = k2d.shape
    d0, d1 = (kh - 1) // 2, (kw - 1) // 2
    ii = jnp.arange(H)
    jj = jnp.arange(W)
    dy = ii[:, None] - ii[None, :] + d0            # (H_in, H_out)
    dx = jj[:, None] - jj[None, :] + d1            # (W_in, W_out)
    vy = (dy >= 0) & (dy < kh)
    vx = (dx >= 0) & (dx < kw)
    ky = jnp.clip(dy, 0, kh - 1)
    kx = jnp.clip(dx, 0, kw - 1)
    taps = k2d[ky[:, :, None, None], kx[None, None, :, :]]               # (Hi, Ho, Wi, Wo)
    mask = (vy[:, :, None, None] & vx[None, None, :, :]).astype(k2d.dtype)
    # rows = flat input pixel (ii*W + jj), cols = flat output pixel (oi*W + oj)
    return (taps * mask).transpose(0, 2, 1, 3).reshape(H * W, H * W)


def cc_layer_kernel(a_ref, b_ref, m_ref, o_ref, *, normalized, eps, eps_p, inv_c):
    # a_ref, b_ref : (1, C, HW)   one batch element, channels x flattened pixels
    # m_ref        : (HW, HW)     conv-as-matmul matrix (zero 'same' padding folded in)
    # o_ref        : (1, 1, HW)   lane-dense output row
    a = a_ref[0].astype(jnp.float32)                        # (C, HW)
    b = b_ref[0].astype(jnp.float32)
    sab = jnp.sum(a * b, axis=0, keepdims=True)             # (1, HW)  sum_c a*b
    if normalized:
        saa = jnp.sum(a * a, axis=0, keepdims=True)
        sbb = jnp.sum(b * b, axis=0, keepdims=True)
        s = jnp.concatenate([sab, saa, sbb], axis=0)        # (3, HW) -> one MXU matmul
        conv = jnp.dot(s, m_ref[...], preferred_element_type=jnp.float32)
        y, na, nb = conv[0:1], conv[1:2], conv[2:3]
        naxnb = jnp.sqrt(jnp.maximum(na * nb, 0.0))
        if eps_p == "both":
            y = (y + eps) / (naxnb + eps)
        else:  # 'futsu' (default)
            y = y / (naxnb + eps)
    else:
        y = jnp.dot(sab, m_ref[...], preferred_element_type=jnp.float32) * inv_c
    o_ref[0] = y.astype(o_ref.dtype)


def cc_layer_forward(a, b, *, d=(5, 5), pfield=2, normalized=False, eps=1e-4,
                     eps_p="futsu"):
    """Pallas forward of CC_layer(dim=2).  a, b: (N, C, H, W) -> (N, 1, H, W)."""
    assert a.shape == b.shape
    N, C, H, W = a.shape
    HW = H * W
    d0 = int(min(d[0], pfield))                 # self.d = np.minimum(d, pfield)
    d1 = int(min(d[1], pfield))

    k2d = build_disk_kernel_2d(d0, d1)
    m = conv_as_matmul_matrix(k2d, H, W)        # (HW, HW) float32, "weight prep"

    a_flat = a.reshape(N, C, HW)                # pure row-major reshape, no transpose/pad
    b_flat = b.reshape(N, C, HW)

    kernel = functools.partial(cc_layer_kernel, normalized=normalized,
                               eps=float(eps), eps_p=eps_p, inv_c=1.0 / C)

    out = pl.pallas_call(
        kernel,
        out_shape=jax.ShapeDtypeStruct((N, 1, HW), a.dtype),
        grid_spec=pltpu.PrefetchScalarGridSpec(
            num_scalar_prefetch=0,
            grid=(N,),                                   # one grid step per batch element
            in_specs=[
                pl.BlockSpec((1, C, HW), lambda n: (n, 0, 0)),
                pl.BlockSpec((1, C, HW), lambda n: (n, 0, 0)),
                pl.BlockSpec((HW, HW), lambda n: (0, 0)),
            ],
            out_specs=pl.BlockSpec((1, 1, HW), lambda n: (n, 0, 0)),
        ),
        compiler_params=pltpu.CompilerParams(
            dimension_semantics=("parallel",)),          # batch is independent -> v7x 2 TCs
    )(a_flat, b_flat, m)

    return out.reshape(N, 1, H, W)
    # TODO(synk): for production H*W, replace the dense (HW,HW) conv matrix with H-tiled
    # shifted-sum taps and re-derive VMEM tiling against v7x's 64 MiB.


def reference_forward(a, b, *, d=(5, 5), pfield=2, normalized=False, eps=1e-4,
                      eps_p="futsu"):
    """Pure-JAX reference matching the PyTorch CC_layer forward (dim=2)."""
    N, C, H, W = a.shape
    d0 = int(min(d[0], pfield))
    d1 = int(min(d[1], pfield))
    k2d = build_disk_kernel_2d(d0, d1)
    w = jnp.broadcast_to(k2d[None, None], (1, C, 2 * d0 + 1, 2 * d1 + 1))
    conv = lambda x: lax.conv_general_dilated(
        x, w, (1, 1), "SAME", dimension_numbers=("NCHW", "OIHW", "NCHW"))
    y = conv(a * b)
    if normalized:
        na = conv(a * a)
        nb = conv(b * b)
        naxnb = jnp.sqrt(jnp.maximum(na * nb, 0.0))
        if eps_p == "both":
            y = (y + eps) / (naxnb + eps)
        else:
            y = y / (naxnb + eps)
    else:
        y = y / C
    return y


if __name__ == "__main__":
    # CC_layer(dim=2, d=[5,5,5], pfield=2) -> 5x5 binary disk; small demo shapes.
    N, C, H, W = 2, 4, 16, 16

    key = jax.random.PRNGKey(0)
    ka, kb = jax.random.split(key)
    a = jax.random.normal(ka, (N, C, H, W), jnp.float32)
    b = jax.random.normal(kb, (N, C, H, W), jnp.float32)

    configs = (
        dict(normalized=False),                      # module default
        dict(normalized=True, eps_p="futsu"),
        dict(normalized=True, eps_p="both"),
    )
    for cfg in configs:
        y = jax.block_until_ready(cc_layer_forward(a, b, pfield=2, **cfg))
        y_ref = jax.block_until_ready(reference_forward(a, b, pfield=2, **cfg))
        assert y.shape == (N, 1, H, W)
        assert jnp.allclose(y, y_ref, atol=1e-4, rtol=1e-4), cfg

    print("KERNEL_OK")
</pallas_src>

<mosaic_0001>
module attributes {stable_mosaic.version = 11 : i64} {
  func.func @cc_layer_kernel(%arg0: i32, %arg1: memref<1x4x256xf32, #tpu.memory_space<vmem>>, %arg2: memref<1x4x256xf32, #tpu.memory_space<vmem>>, %arg3: memref<256x256xf32, #tpu.memory_space<vmem>>, %arg4: memref<1x1x256xf32, #tpu.memory_space<vmem>>) attributes {dimension_semantics = [#tpu.dimension_semantics<parallel>], iteration_bounds = array<i64: 2>, scalar_prefetch = 0 : i64, scratch_operands = 0 : i64, tpu.core_type = #tpu.core_type<tc>, window_params = [{transform_indices = @transform_0, window_bounds = array<i64: 1, 4, 256>}, {transform_indices = @transform_1, window_bounds = array<i64: 1, 4, 256>}, {pipeline_mode = #tpu.pipeline_mode<synchronous>, transform_indices = @transform_2, window_bounds = array<i64: 256, 256>}, {transform_indices = @transform_3, window_bounds = array<i64: 1, 1, 256>}]} {
    %c0 = arith.constant 0 : index
    %c0_0 = arith.constant 0 : index
    %c0_1 = arith.constant 0 : index
    %0 = vector.load %arg1[%c0, %c0_0, %c0_1] : memref<1x4x256xf32, #tpu.memory_space<vmem>>, vector<1x4x256xf32>
    %1 = vector.shape_cast %0 : vector<1x4x256xf32> to vector<4x256xf32>
    %c0_2 = arith.constant 0 : index
    %c0_3 = arith.constant 0 : index
    %c0_4 = arith.constant 0 : index
    %2 = vector.load %arg2[%c0_2, %c0_3, %c0_4] : memref<1x4x256xf32, #tpu.memory_space<vmem>>, vector<1x4x256xf32>
    %3 = vector.shape_cast %2 : vector<1x4x256xf32> to vector<4x256xf32>
    %4 = arith.mulf %1, %3 : vector<4x256xf32>
    %cst = arith.constant dense<0.000000e+00> : vector<256xf32>
    %5 = vector.multi_reduction <add>, %4, %cst [0] : vector<4x256xf32> to vector<256xf32>
    %6 = vector.shape_cast %5 : vector<256xf32> to vector<1x256xf32>
    %c0_5 = arith.constant 0 : index
    %c0_6 = arith.constant 0 : index
    %7 = vector.load %arg3[%c0_5, %c0_6] : memref<256x256xf32, #tpu.memory_space<vmem>>, vector<256x256xf32>
    %cst_7 = arith.constant dense<0.000000e+00> : vector<1x256xf32>
    %8 = tpu.matmul %6, %7, %cst_7 {dimension_numbers = #tpu.dot_dimension_numbers<[1], [0], [0], [1], [0, 0, 1, 1], [], []>} : vector<1x256xf32>, vector<256x256xf32>, vector<1x256xf32> -> vector<1x256xf32>
    %cst_8 = arith.constant 2.500000e-01 : f32
    %9 = vector.broadcast %cst_8 : f32 to vector<1x256xf32>
    %10 = arith.mulf %8, %9 : vector<1x256xf32>
    %c0_9 = arith.constant 0 : index
    %c0_10 = arith.constant 0 : index
    %c0_11 = arith.constant 0 : index
    %11 = vector.load %arg4[%c0_9, %c0_10, %c0_11] : memref<1x1x256xf32, #tpu.memory_space<vmem>>, vector<1x1x256xf32>
    %12 = vector.shape_cast %11 : vector<1x1x256xf32> to vector<1x256xf32>
    %13 = vector.shape_cast %10 : vector<1x256xf32> to vector<1x1x256xf32>
    tpu.vector_store %arg4[%c0_9, %c0_10, %c0_11], %13 {strides = array<i32>} : memref<1x1x256xf32, #tpu.memory_space<vmem>>, vector<1x1x256xf32>,
    return
  }
  func.func @transform_0(%arg0: i32) -> (i32, i32, i32) {
    %c0_i32 = arith.constant 0 : i32
    %c0_i32_0 = arith.constant 0 : i32
    %c0_i32_1 = arith.constant 0 : i32
    return %arg0, %c0_i32, %c0_i32_0 : i32, i32, i32
  }
  func.func @transform_1(%arg0: i32) -> (i32, i32, i32) {
    %c0_i32 = arith.constant 0 : i32
    %c0_i32_0 = arith.constant 0 : i32
    %c0_i32_1 = arith.constant 0 : i32
    return %arg0, %c0_i32, %c0_i32_0 : i32, i32, i32
  }
  func.func @transform_2(%arg0: i32) -> (i32, i32) {
    %c0_i32 = arith.constant 0 : i32
    %c0_i32_0 = arith.constant 0 : i32
    %c0_i32_1 = arith.constant 0 : i32
    return %c0_i32, %c0_i32_0 : i32, i32
  }
  func.func @transform_3(%arg0: i32) -> (i32, i32, i32) {
    %c0_i32 = arith.constant 0 : i32
    %c0_i32_0 = arith.constant 0 : i32
    %c0_i32_1 = arith.constant 0 : i32
    return %arg0, %c0_i32, %c0_i32_0 : i32, i32, i32
  }
}

</mosaic_0001>

<bundles_post_ra>
// kernel: tpu_custom_call.1
= control target key start
LH: loop header
LB: loop body
LE: loop exit
PB: predicated region body
PF: predicated region fallthrough
CT: control target
= control target key end

     0   :  { %8 = vsyncpa [#allocation3], 0  ;;  %s1119_s0 = inlined_call_operand.hbm [shape: f32[2,4,256], index: 0, kind: input, shape index: {}]   ;;  %s1120_s1 = inlined_call_operand.hbm [shape: f32[2,4,256], index: 1, kind: input, shape index: {}]   ;;  %s1121_s2 = inlined_call_operand.hbm [shape: f32[256,256], index: 2, kind: input, shape index: {}]   ;;  %s1122_s3 = inlined_call_operand.hbm [shape: f32[2,1,256], index: 3, kind: output, shape index: {}]  }
   0x1   :  { %10 = vsyncpa [#allocation3 + $0x1], 0 }
   0x2   :  { %11 = vsyncpa [#allocation6], 0 }
   0x3   :  { %13 = vsyncpa [#allocation6 + $0x1], 0 }
   0x4   :  { %14 = vsyncpa [#allocation4], 0 }
   0x5   :  { %16 = vsyncpa [#allocation4 + $0x1], 0  ;;  %s880_s12 = smov 0   ;;  %s882_s13 = smov 0  }
   0x6   :  { %s884_s14 = smov 0   ;;  %s886_s15 = smov 0  }
   0x7 LB: > { %s901_s16 = sadd.s32 4294967295, %s851_s15   ;;  %s537_s17 = sadd.s32 4294967294, %s851_s15   ;;  %s851_s15 = sphi %s886_s15, %s1144_s15   ;;  %s847_s14 = sphi %s884_s14, %s1143_s14   ;;  %s843_s13 = sphi %s882_s13, %s1142_s13   ;;  %s839_s12 = sphi %s880_s12, %s1141_s12  }
   0x8   : > { %p42_p0 = scmp.ne.s32.totalorder %s843_s13, %s839_s12  ;;  %p1123_p1 = scmp.eq.s32.totalorder %s901_s16, 0 }
   0x9   : > { %p119_p3 = scmp.eq.s32.totalorder %s537_s17, 1  ;;  %p538_p5 = scmp.ge.s32.totalorder %s851_s15, 1 }
   0xa   : > { %p910_p4 = por %p1123_p1, %p42_p0  ;;  %p126_p7 = scmp.lt.s32.totalorder %s851_s15, 3 }
   0xb   : > { %p915_p6 = por %p119_p3, %p42_p0  ;;  %s853_s21 = smov [#allocation7]  }
   0xc   : > { %s1127_s18 = scalar_select %p910_p4, 1, 0 }
   0xd   : > { %s1128_s19 = scalar_select %p915_p6, 1, 0 }
   0xe   : > { %p920_p8 = pnand %p538_p5, %p126_p7  ;;  %s138_s22 = sshll.u32 %s853_s21, 4  ;;  %s924_s22 = int_to_ptr.vmem [resolvable:$true] %s138_s22 }
   0xf   : > { %s936_s24 = sadd.s32 1, %s851_s15   ;;  %s29_s25 = sadd.s32 1, %s847_s14 }
  0x10   : > { %s1129_s20 = scalar_select %p920_p8, 1, 0 }
  0x11   : > { %p634_p9 = pneg %p920_p8  ;;  %s26_s26 = ssub.s32 %s851_s15, %s936_s24 }
  0x12   : > { %s689_s29 = scalar_lea.hbm %s1121_s2, 8192 }
  0x13   : > { %p931_p11 = pnand %p634_p9, %p1123_p1  ;;  %p690_p12 = scmp.ne.s32.totalorder %s1121_s2, %s689_s29 }
  0x14   : > { %p696_p5 = scmp.lt.u32.totalorder %s689_s29, %s1121_s2 }
  0x15   : > { %p691_p13 = pneg %p931_p11 }
  0x17   : > { %p692_p0 = pnand %p691_p13, %p690_p12 }
  0x19   : > { %p693_p3 = pneg %p692_p0 }
  0x1b   : > { %p698_p7 = pnand %p696_p5, %p693_p3 }
  0x1d   : > { %701 = shalt.err (!%p698_p7)
}
  0x1e   : > { %s702_s7 = scalar_lea.vmem %s924_s22, 8192  ;;  %p710_p2 = scmp.lt.s32.totalorder %s924_s22, %s924_s22 }
  0x1f   : > { %p703_p9 = scmp.ne.s32.totalorder %s924_s22, %s702_s7  ;;  %p711_p6 = scmp.lt.s32.totalorder %s702_s7, %s702_s7 }
  0x21   : > { %p705_p10 = pnand %p703_p9, %p691_p13  ;;  %p712_p4 = por %p711_p6, %p710_p2 }
  0x23   : > { %p706_p1 = pneg %p705_p10 }
  0x25   : > { %p713_p8 = pnand %p712_p4, %p706_p1 }
  0x27   : > { %716 = shalt.err (!%p713_p8)
}
  0x28   : > { %s854_s8 = smov 256   ;;  %s855_s9 = smov 16  }
  0x29   : > { %637 = dma.hbm_to_vmem [thread:$0]  (!%p931_p11), %s1121_s2, 8192, %s924_s22, [#allocation6], %s854_s8, %s854_s8, %s855_s9  }
  0x2a   : > { %p27_p2 = scmp.eq.s32.totalorder %s26_s26, 0  ;;  %p36_p1 = scmp.ne.s32.totalorder %s847_s14, %s843_s13 }
  0x2b   : > { %p37_p4 = scmp.eq.s32.totalorder %s851_s15, 0  ;;  %p650_p6 = scmp.lt.s32.totalorder %s851_s15, 2 }
  0x2c   : > { %s967_s17 = scalar_select %p27_p2, %s847_s14, %s29_s25  }
  0x2d   : > { %p38_p8 = por %p37_p4, %p36_p1  ;;  %p1131_p10 = scmp.eq.s32.totalorder %s901_s16, 1 }
  0x2e   : > { %s152_s27 = sand.u32 1, %s847_s14   ;;  %s557_s28 = sshll.u32 %s851_s15, 7 }
  0x2f   : > { %p971_p12 = por %p1131_p10, %p36_p1  ;;  %s977_s29 = sshll.u32 %s152_s27, 3 }
  0x30   : > { %s982_s22 = scalar_lea.hbm %s1119_s0, %s557_s28  ;;  %s156_s25 = scalar_lea.vmem [#allocation2], %s977_s29 }
  0x31   : > { %s1132_s21 = scalar_select %p971_p12, 1, 0 }
  0x32   : > { %s164_s26 = sshll.u32 %s156_s25, 4  ;;  %p985_p11 = pnand %p650_p6, %p38_p8  ;;  %s989_s26 = int_to_ptr.vmem [resolvable:$true] %s164_s26 }
  0x33   : > { %s994_s7 = scalar_lea.hbm %s1120_s1, %s557_s28  ;;  %s153_s8 = scalar_lea.sflag [#allocation3], %s152_s27 }
  0x34   : > { %s717_s9 = scalar_lea.hbm %s982_s22, 128  ;;  %p719_p0 = pneg %p985_p11 }
  0x35   : > { %p718_p13 = scmp.ne.s32.totalorder %s982_s22, %s717_s9  ;;  %s722_s23 = scalar_lea.hbm %s1119_s0, 256 }
  0x36   : > { %p723_p7 = scmp.lt.u32.totalorder %s982_s22, %s1119_s0  ;;  %p724_p9 = scmp.lt.u32.totalorder %s722_s23, %s717_s9 }
  0x37   : > { %p720_p3 = pnand %p719_p0, %p718_p13  ;;  %p726_p1 = scmp.lt.u32.totalorder %s717_s9, %s982_s22 }
  0x38   : > { %p725_p2 = por %p724_p9, %p723_p7 }
  0x39   : > { %p721_p5 = pneg %p720_p3 }
  0x3a   : > { %p727_p4 = por %p726_p1, %p725_p2 }
  0x3c   : > { %p728_p6 = pnand %p727_p4, %p721_p5 }
  0x3e   : > { %731 = shalt.err (!%p728_p6)
}
  0x3f   : > { %s732_s27 = scalar_lea.vmem %s989_s26, 128  ;;  %s856_s28 = smov [#allocation2]  }
  0x40   : > { %p733_p8 = scmp.ne.s32.totalorder %s989_s26, %s732_s27  ;;  %s737_s5 = sshll.u32 %s856_s28, 4  ;;  %s738_s5 = int_to_ptr.vmem [resolvable:$false] %s737_s5 }
  0x41   : > { %s739_s6 = scalar_lea.vmem %s738_s5, 256  ;;  %p740_p3 = scmp.lt.s32.totalorder %s989_s26, %s738_s5 }
  0x42   : > { %p735_p10 = pnand %p733_p8, %p719_p0  ;;  %p741_p7 = scmp.lt.s32.totalorder %s739_s6, %s732_s27 }
  0x44   : > { %p736_p13 = pneg %p735_p10  ;;  %p742_p9 = por %p741_p7, %p740_p3 }
  0x46   : > { %p743_p2 = pnand %p742_p9, %p736_p13 }
  0x48   : > { %746 = shalt.err (!%p743_p2)
}
  0x49   : > { %641 = dma.hbm_to_vmem [thread:$0]  (!%p985_p11), %s982_s22, 128, %s989_s26, %s153_s8  }
  0x4a   : > { %s171_s9 = sand.u32 1, %s851_s15   ;;  %s175_s10 = scalar_lea.vmem [#allocation5], %s977_s29 }
  0x4b   : > { %s183_s11 = sshll.u32 %s175_s10, 4  ;;  %s172_s23 = scalar_lea.sflag [#allocation6], %s171_s9  ;;  %s184_s11 = int_to_ptr.vmem [resolvable:$true] %s183_s11 }
  0x4c   : > { %s747_s30 = scalar_lea.hbm %s994_s7, 128  ;;  %s752_s28 = scalar_lea.hbm %s1120_s1, 256 }
  0x4d   : > { %p748_p5 = scmp.ne.s32.totalorder %s994_s7, %s747_s30  ;;  %p753_p6 = scmp.lt.u32.totalorder %s994_s7, %s1120_s1 }
  0x4e   : > { %p754_p8 = scmp.lt.u32.totalorder %s752_s28, %s747_s30  ;;  %p756_p13 = scmp.lt.u32.totalorder %s747_s30, %s994_s7 }
  0x4f   : > { %p750_p1 = pnand %p748_p5, %p719_p0 }
  0x50   : > { %p755_p10 = por %p754_p8, %p753_p6 }
  0x51   : > { %p751_p4 = pneg %p750_p1 }
  0x52   : > { %p757_p3 = por %p756_p13, %p755_p10 }
  0x54   : > { %p758_p7 = pnand %p757_p3, %p751_p4 }
  0x56   : > { %761 = shalt.err (!%p758_p7)
}
  0x57   : > { %s762_s29 = scalar_lea.vmem %s184_s11, 128  ;;  %s857_s22 = smov [#allocation5]  }
  0x58   : > { %p763_p9 = scmp.ne.s32.totalorder %s184_s11, %s762_s29  ;;  %s767_s26 = sshll.u32 %s857_s22, 4  ;;  %s768_s26 = int_to_ptr.vmem [resolvable:$false] %s767_s26 }
  0x59   : > { %s769_s8 = scalar_lea.vmem %s768_s26, 256  ;;  %p770_p1 = scmp.lt.s32.totalorder %s184_s11, %s768_s26 }
  0x5a   : > { %p765_p2 = pnand %p763_p9, %p719_p0  ;;  %p771_p12 = scmp.lt.s32.totalorder %s769_s8, %s762_s29 }
  0x5c   : > { %p766_p5 = pneg %p765_p2  ;;  %p772_p6 = por %p771_p12, %p770_p1 }
  0x5e   : > { %p773_p8 = pnand %p772_p6, %p766_p5 }
  0x60   : > { %776 = shalt.err (!%p773_p8)
}
  0x61   : > { %644 = dma.hbm_to_vmem [thread:$0]  (!%p985_p11), %s994_s7, 128, %s184_s11, %s172_s23  }
  0x62   : > { %p1134_p4 = scmp.ne.s32.totalorder %s1129_s20, 0 }
  0x63   : > { %s1045_s9 = sand.u32 (!%p1134_p4), 1, %s843_s13   ;;  %p1135_p12 = scmp.ne.s32.totalorder (!%p1134_p4), %s1127_s18, 0 }
  0x64   : > { %192 = sbr.rel (%p1134_p4) target bundleno = 416 (0x1a0), region = 32  ;;  %s548_s10 = sshll.u32 (!%p1134_p4), %s1045_s9, 3 }
  0x65   : > { %s195_s30 = scalar_lea.sflag (!%p1134_p4), [#allocation3], %s1045_s9  ;;  %s1049_s25 = scalar_lea.vmem (!%p1134_p4), [#allocation2], %s548_s10 }
  0x6b   : > { %822 = dma.done.wait (%p1135_p12), %s195_s30, 128  }
  0x6c   : > { %824 = vsyncadd (%p1135_p12), %s195_s30, 4294967168  ;;  %s203_s4 = sand.u32 1, %s901_s16   ;;  %s1056_s7 = scalar_lea.vmem [#allocation5], %s548_s10 }
  0x6d   : > { %s204_s20 = scalar_lea.sflag [#allocation6], %s203_s4 }
  0x6e   : > { %826 = dma.done.wait (%p1135_p12), %s204_s20, 128  }
  0x6f   : > { %828 = vsyncadd (%p1135_p12), %s204_s20, 4294967168  ;;  %p1136_p11 = scmp.eq.s32.totalorder %s901_s16, 0 }
  0x71   : > { %830 = dma.done.wait (%p1136_p11), [#allocation6], 8192   ;;  %p1137_p0 = pmov %p1136_p11 }
  0x72   : > { %v261_v0 = vld [vmem:[#allocation7 + $0x8] sm:$0xff]  ;;  %v263_v1 = vld [vmem:[#allocation7 + $0x18] sm:$0xff]  ;;  %v260_v2 = vld [vmem:[#allocation7] sm:$0xff]  ;;  %vm245_vm0 = vcmask 1043456   ;;  %s551_s18 = sshll.u32 %s1045_s9, 1  ;;  %s559_s11 = sshll.u32 %s901_s16, 5 }
  0x73   : > { %832 = vsyncadd (%p1137_p0), [#allocation6], 4294959104  ;;  %v560_v3 = vpack.c.bf16 %v263_v1, %v261_v0  ;;  %v262_v4 = vld [vmem:[#allocation7 + $0x10] sm:$0xff]  ;;  %v265_v5 = vld [vmem:[#allocation7 + $0x28] sm:$0xff]  ;;  %s238_s23 = scalar_lea.vmem [#allocation8], %s551_s18  ;;  %s1075_s6 = scalar_lea.hbm %s1122_s3, %s559_s11 }
  0x74   : > { %v267_v6 = vld [vmem:[#allocation7 + $0x38] sm:$0xff]  ;;  %v562_v7 = vpack.c.bf16 %v262_v4, %v260_v2  ;;  %v264_v9 = vld [vmem:[#allocation7 + $0x20] sm:$0xff]  ;;  %v266_v10 = vld [vmem:[#allocation7 + $0x30] sm:$0xff]  ;;  %s435_s27 = sshll.u32 %s238_s23, 4  ;;  %s421_s29 = scalar_lea.sflag [#allocation4], %s1045_s9  ;;  %s1077_s27 = int_to_ptr.vmem [resolvable:$true] %s435_s27 }
  0x75   : > { %v564_v8 = vpack.c.bf16 %v267_v6, %v265_v5  ;;  %v269_v11 = vld [vmem:[#allocation7 + $0x48] sm:$0xff]  ;;  %561 = vmatprep.subr.bf16.mxu0 %v560_v3  ;;  %v271_v12 = vld [vmem:[#allocation7 + $0x58] sm:$0xff]  ;;  %v566_v13 = vpack.c.bf16 %v266_v10, %v264_v9  ;;  %v268_v15 = vld [vmem:[#allocation7 + $0x40] sm:$0xff]  ;;  %s777_s22 = scalar_lea.vmem %s1077_s27, 32  ;;  %p1138_p13 = scmp.ne.s32.totalorder %s1132_s21, 0 }
  0x76   : > { %563 = vmatpush1.bf16.msra.mxu0 %v562_v7  ;;  %v568_v14 = vpack.c.bf16 %v271_v12, %v269_v11  ;;  %v270_v16 = vld [vmem:[#allocation7 + $0x50] sm:$0xff]  ;;  %v273_v17 = vld [vmem:[#allocation7 + $0x68] sm:$0xff]  ;;  %v275_v18 = vld [vmem:[#allocation7 + $0x78] sm:$0xff]  ;;  %p778_p10 = scmp.ne.s32.totalorder %s1077_s27, %s777_s22  ;;  %s859_s16 = smov [#allocation8]  }
  0x77   : > { %565 = vmatprep.subr.bf16.mxu0 %v564_v8  ;;  %v570_v19 = vpack.c.bf16 %v270_v16, %v268_v15  ;;  %v572_v20 = vpack.c.bf16 %v275_v18, %v273_v17  ;;  %v272_v21 = vld [vmem:[#allocation7 + $0x60] sm:$0xff]  ;;  %v274_v22 = vld [vmem:[#allocation7 + $0x70] sm:$0xff]  ;;  %v277_v23 = vld [vmem:[#allocation7 + $0x88] sm:$0xff]  ;;  %s781_s26 = sshll.u32 %s859_s16, 4  ;;  %s782_s26 = int_to_ptr.vmem [resolvable:$false] %s781_s26 }
  0x78   : > { %v279_v24 = vld [vmem:[#allocation7 + $0x98] sm:$0xff]  ;;  %v574_v25 = vpack.c.bf16 %v274_v22, %v272_v21  ;;  %v276_v27 = vld [vmem:[#allocation7 + $0x80] sm:$0xff]  ;;  %v278_v28 = vld [vmem:[#allocation7 + $0x90] sm:$0xff]  ;;  %p779_p3 = pnand %p778_p10, %p1138_p13  ;;  %s783_s8 = scalar_lea.vmem %s782_s26, 64 }
  0x79   : > { %v576_v26 = vpack.c.bf16 %v279_v24, %v277_v23  ;;  %v281_v29 = vld [vmem:[#allocation7 + $0xa8] sm:$0xff]  ;;  %v283_v30 = vld [vmem:[#allocation7 + $0xb8] sm:$0xff]  ;;  %v578_v31 = vpack.c.bf16 %v278_v28, %v276_v27  ;;  %v280_v33 = vld [vmem:[#allocation7 + $0xa0] sm:$0xff]  ;;  %p784_p9 = scmp.lt.s32.totalorder %s1077_s27, %s782_s26  ;;  %p785_p2 = scmp.lt.s32.totalorder %s783_s8, %s777_s22 }
  0x7a   : > { %567 = vmatpush1.bf16.msra.mxu0 %v566_v13  ;;  %v580_v32 = vpack.c.bf16 %v283_v30, %v281_v29  ;;  %v282_v34 = vld [vmem:[#allocation7 + $0xb0] sm:$0xff]  ;;  %v285_v35 = vld [vmem:[#allocation7 + $0xc8] sm:$0xff]  ;;  %v287_v36 = vld [vmem:[#allocation7 + $0xd8] sm:$0xff]  ;;  %p780_p7 = pneg %p779_p3 }
  0x7b   : > { %569 = vmatprep.subr.bf16.mxu0 %v568_v14  ;;  %v582_v37 = vpack.c.bf16 %v282_v34, %v280_v33  ;;  %v284_v38 = vld [vmem:[#allocation7 + $0xc0] sm:$0xff]  ;;  %v584_v39 = vpack.c.bf16 %v287_v36, %v285_v35  ;;  %v286_v40 = vld [vmem:[#allocation7 + $0xd0] sm:$0xff]  ;;  %v289_v43 = vld [vmem:[#allocation7 + $0xe8] sm:$0xff]  ;;  %p786_p5 = por %p785_p2, %p784_p9 }
  0x7c   : > { %v239_v41 = vld [vmem:[%s1049_s25] sm:$0xff]  ;;  %v240_v42 = vld [vmem:[%s1056_s7] sm:$0xff]  ;;  %v586_v46 = vpack.c.bf16 %v286_v40, %v284_v38 }
  0x7d   : > { %v291_v44 = vld [vmem:[#allocation7 + $0xf8] sm:$0xff]  ;;  %v241_v45 = vmul.f32 %v240_v42, %v239_v41  ;;  %v288_v49 = vld [vmem:[#allocation7 + $0xe0] sm:$0xff]  ;;  %v290_v50 = vld [vmem:[#allocation7 + $0xf0] sm:$0xff]  ;;  %p787_p1 = pnand %p786_p5, %p780_p7 }
  0x7e   : > { %571 = vmatpush1.bf16.msra.mxu0 %v570_v19  ;;  %v588_v48 = vpack.c.bf16 %v291_v44, %v289_v43  ;;  %v293_v51 = vld [vmem:[#allocation7 + $0x108] sm:$0xff]  ;;  %v295_v52 = vld [vmem:[#allocation7 + $0x118] sm:$0xff]  ;;  %v590_v55 = vpack.c.bf16 %v290_v50, %v288_v49  ;;  %v292_v57 = vld [vmem:[#allocation7 + $0x100] sm:$0xff]  ;;  %v858_v50 = vmov 1966171168  }
  0x7f   : > { %573 = vmatprep.subr.bf16.mxu0 %v572_v20  ;;  %v243_v47 = vcombine.high %v241_v45, %v241_v45  ;;  %v592_v56 = vpack.c.bf16 %v295_v52, %v293_v51  ;;  %v294_v58 = vld [vmem:[#allocation7 + $0x110] sm:$0xff]  ;;  %v297_v60 = vld [vmem:[#allocation7 + $0x128] sm:$0xff]  ;;  %v299_v61 = vld [vmem:[#allocation7 + $0x138] sm:$0xff]  ;;  %v246_v15 = vsel %vm245_vm0, %v241_v45, 0.0  ;;  %v401_v51 = vunpack.c.l.s4 %v858_v50 }
  0x80   : > { %v594_v63 = vpack.c.bf16 %v294_v58, %v292_v57  ;;  %v596_v0 = vpack.c.bf16 %v299_v61, %v297_v60  ;;  %v296_v1 = vld [vmem:[#allocation7 + $0x120] sm:$0xff]  ;;  %v298_v2 = vld [vmem:[#allocation7 + $0x130] sm:$0xff]  ;;  %v301_v4 = vld [vmem:[#allocation7 + $0x148] sm:$0xff]  ;;  %v247_v21 = vrot.slane %v246_v15, 4  ;;  %v403_v52 = vlaneseq }
  0x81   : > { %v253_v53 = vsel %vm245_vm0, %v243_v47, 0.0  ;;  %v303_v5 = vld [vmem:[#allocation7 + $0x158] sm:$0xff]  ;;  %v598_v7 = vpack.c.bf16 %v298_v2, %v296_v1  ;;  %v300_v9 = vld [vmem:[#allocation7 + $0x140] sm:$0xff]  ;;  %v302_v10 = vld [vmem:[#allocation7 + $0x150] sm:$0xff] }
  0x82   : > { %575 = vmatpush1.bf16.msra.mxu0 %v574_v25  ;;  %v254_v54 = vrot.slane %v253_v53, 4  ;;  %v600_v8 = vpack.c.bf16 %v303_v5, %v301_v4  ;;  %v305_v12 = vld [vmem:[#allocation7 + $0x168] sm:$0xff]  ;;  %v307_v13 = vld [vmem:[#allocation7 + $0x178] sm:$0xff]  ;;  %v602_v14 = vpack.c.bf16 %v302_v10, %v300_v9  ;;  %v304_v17 = vld [vmem:[#allocation7 + $0x160] sm:$0xff]  ;;  %v248_v28 = vadd.f32 %v247_v21, %v246_v15 }
  0x83   : > { %577 = vmatprep.subr.bf16.mxu0 %v576_v26  ;;  %v604_v16 = vpack.c.bf16 %v307_v13, %v305_v12  ;;  %v306_v18 = vld [vmem:[#allocation7 + $0x170] sm:$0xff]  ;;  %v309_v19 = vld [vmem:[#allocation7 + $0x188] sm:$0xff]  ;;  %v311_v20 = vld [vmem:[#allocation7 + $0x198] sm:$0xff]  ;;  %vm417_vm1 = vcmp.lt.s32.totalorder %v403_v52, 256 }
  0x84   : > { %v255_v59 = vadd.f32 %v254_v54, %v253_v53  ;;  %v606_v22 = vpack.c.bf16 %v306_v18, %v304_v17  ;;  %v608_v23 = vpack.c.bf16 %v311_v20, %v309_v19  ;;  %v308_v24 = vld [vmem:[#allocation7 + $0x180] sm:$0xff]  ;;  %v310_v25 = vld [vmem:[#allocation7 + $0x190] sm:$0xff]  ;;  %v313_v26 = vld [vmem:[#allocation7 + $0x1a8] sm:$0xff]  ;;  %v249_v35 = vrot.slane %v248_v28, 2 }
  0x85   : > { %v315_v27 = vld [vmem:[#allocation7 + $0x1b8] sm:$0xff]  ;;  %v610_v29 = vpack.c.bf16 %v310_v25, %v308_v24  ;;  %v317_v33 = vld [vmem:[#allocation7 + $0x1c8] sm:$0xff]  ;;  %v316_v38 = vld [vmem:[#allocation7 + $0x1c0] sm:$0xff]  ;;  %v402_v53 = vunpack.c.0.s8 %v401_v51  ;;  %v404_v54 = vshrl.u32 %v403_v52, 7 }
  0x86   : > { %579 = vmatpush1.bf16.msra.mxu0 %v578_v31  ;;  %v256_v62 = vrot.slane %v255_v59, 2  ;;  %v612_v30 = vpack.c.bf16 %v315_v27, %v313_v26  ;;  %v312_v31 = vld [vmem:[#allocation7 + $0x1a0] sm:$0xff]  ;;  %v319_v34 = vld [vmem:[#allocation7 + $0x1d8] sm:$0xff]  ;;  %v321_v40 = vld [vmem:[#allocation7 + $0x1e8] sm:$0xff]  ;;  %v250_v42 = vadd.f32 %v249_v35, %v248_v28 }
  0x87   : > { %581 = vmatprep.subr.bf16.mxu0 %v580_v32  ;;  %v314_v32 = vld [vmem:[#allocation7 + $0x1b0] sm:$0xff]  ;;  %v323_v41 = vld [vmem:[#allocation7 + $0x1f8] sm:$0xff]  ;;  %v320_v45 = vld [vmem:[#allocation7 + $0x1e0] sm:$0xff] }
  0x88   : > { %v257_v3 = vadd.f32 %v256_v62, %v255_v59  ;;  %v614_v36 = vpack.c.bf16 %v314_v32, %v312_v31  ;;  %v620_v44 = vpack.c.bf16 %v323_v41, %v321_v40  ;;  %v251_v47 = vrot.slane %v250_v42, 1 }
  0x89   : > { %v405_v59 = vsub.s32 %v402_v53, %v404_v54 }
  0x8a   : > { %583 = vmatpush1.bf16.msra.mxu0 %v582_v37  ;;  %v258_v6 = vrot.slane %v257_v3, 1  ;;  %v616_v37 = vpack.c.bf16 %v319_v34, %v317_v33  ;;  %v252_v49 = vadd.f32 %v251_v47, %v250_v42 }
  0x8b   : > { %585 = vmatprep.subr.bf16.mxu0 %v584_v39  ;;  %v318_v39 = vld [vmem:[#allocation7 + $0x1d0] sm:$0xff] }
  0x8c   : > { %v259_v11 = vadd.f32 %v258_v6, %v257_v3  ;;  %v618_v43 = vpack.c.bf16 %v318_v39, %v316_v38 }
  0x8e   : > { %587 = vmatpush1.bf16.msra.mxu0 %v586_v46  ;;  %388 = vmatprep.mubr.f32.mxu0 %v259_v11  ;;  %v322_v46 = vld [vmem:[#allocation7 + $0x1f0] sm:$0xff] }
  0x8f   : > { %589 = vmatprep.subr.bf16.mxu0 %v588_v48  ;;  %v622_v48 = vpack.c.bf16 %v322_v46, %v320_v45 }
  0x92   : > { %591 = vmatpush1.bf16.msra.mxu0 %v590_v55 }
  0x93   : > { %593 = vmatprep.subr.bf16.mxu0 %v592_v56 }
  0x96   : > { %595 = vmatpush1.bf16.msra.mxu0 %v594_v63 }
  0x97   : > { %597 = vmatprep.subr.bf16.mxu0 %v596_v0 }
  0x9a   : > { %599 = vmatpush1.bf16.msra.mxu0 %v598_v7 }
  0x9b   : > { %601 = vmatprep.subr.bf16.mxu0 %v600_v8 }
  0x9e   : > { %603 = vmatpush1.bf16.msra.mxu0 %v602_v14 }
  0x9f   : > { %605 = vmatprep.subr.bf16.mxu0 %v604_v16 }
  0xa2   : > { %607 = vmatpush1.bf16.msra.mxu0 %v606_v22 }
  0xa3   : > { %609 = vmatprep.subr.bf16.mxu0 %v608_v23 }
  0xa6   : > { %611 = vmatpush1.bf16.msra.mxu0 %v610_v29 }
  0xa7   : > { %613 = vmatprep.subr.bf16.mxu0 %v612_v30 }
  0xaa   : > { %615 = vmatpush1.bf16.msra.mxu0 %v614_v36 }
  0xab   : > { %617 = vmatprep.subr.bf16.mxu0 %v616_v37 }
  0xae   : > { %619 = vmatpush1.bf16.msra.mxu0 %v618_v43 }
  0xaf   : > { %621 = vmatprep.subr.bf16.mxu0 %v620_v44 }
  0xb2   : > { %623 = vmatpush1.bf16.msra.mxu0 %v622_v48 }
  0xb5   : > { %389 = vmatmul.mubr.f32.vlgmr.msra.gmra.mrb[0].mxu0 %v252_v49 }
 0x188   : > { %v390_v55 = vpop.f32.mrb[0].mxu0 }
 0x189   : > { %v395_v56 = vmul.f32 0.25, %v390_v55  ;;  %v392_v57 = vpop.f32.mrb[1].mxu0 }
 0x18a   : > { %v396_v58 = vmul.f32 0.25, %v392_v57 }
 0x18c   : > { %v399_v60 = vcombine.low %v395_v56, %v396_v58 }
 0x18e   : > { %v406_v61 = vrot.slane %v399_v60, %v405_v59 }
 0x190   : > { %v413_v62 = vrot.slane %v406_v61, %v405_v59 }
 0x192   : > { %419 = vst.msk [vmem:[%s238_s23] sm:$0x3] %vm417_vm1, %v413_v62 }
 0x193   : > { %790 = shalt.err (!%p787_p1)
}
 0x194   : > { %s791_s9 = scalar_lea.hbm %s1075_s6, 32  ;;  %s795_s25 = scalar_lea.hbm %s1122_s3, 64 }
 0x195   : > { %p792_p6 = scmp.ne.s32.totalorder %s1075_s6, %s791_s9  ;;  %p796_p12 = scmp.lt.u32.totalorder %s1075_s6, %s1122_s3 }
 0x196   : > { %p797_p11 = scmp.lt.u32.totalorder %s795_s25, %s791_s9  ;;  %p799_p10 = scmp.lt.u32.totalorder %s791_s9, %s1075_s6 }
 0x197   : > { %p793_p8 = pnand %p792_p6, %p1138_p13 }
 0x198   : > { %p798_p0 = por %p797_p11, %p796_p12 }
 0x199   : > { %p794_p4 = pneg %p793_p8 }
 0x19a   : > { %p800_p3 = por %p799_p10, %p798_p0 }
 0x19c   : > { %p801_p7 = pnand %p800_p3, %p794_p4 }
 0x19e   : > { %804 = shalt.err (!%p801_p7)
}
 0x19f   : > { %632 = dma.vmem_to_hbm [thread:$0]  (%p1138_p13), %s1077_s27, 32, %s1075_s6, %s421_s29  }
 0x1a0 PF: > { %s447_s7 = sand.u32 1, %s839_s12   ;;  %p1139_p9 = scmp.ne.s32.totalorder %s1128_s19, 0 }
 0x1a1   : > { %p1140_p2 = scmp.ge.s32.totalorder %s851_s15, 2  ;;  %s448_s18 = scalar_lea.sflag [#allocation4], %s447_s7 }
 0x1a3   : > { %p646_p5 = pnand %p1140_p2, %p1139_p9 }
 0x1a5   : > { %834 = dma.done.wait (!%p646_p5), %s448_s18, 32  }
 0x1a6   : > { %836 = vsyncadd (!%p646_p5), %s448_s18, 4294967264  ;;  %p19_p1 = scmp.ge.s32.totalorder %s936_s24, 4   ;;  %s1141_s12 = smov %s843_s13 }
 0x1a7   : > { %s1142_s13 = smov %s847_s14  ;;  %s1143_s14 = smov %s967_s17 }
 0x1a8   : > { %s1144_s15 = smov %s936_s24  ;;  %21 = sbr.rel (!%p19_p1) target bundleno = 7 (0x7), region = 94 }
 0x1af   :  { %453 = vsyncpa [#allocation3], 1 }
 0x1b0   :  { %455 = vsyncpa [#allocation3 + $0x1], 1 }
 0x1b1   :  { %456 = vsyncpa [#allocation6], 1 }
 0x1b2   :  { %458 = vsyncpa [#allocation6 + $0x1], 1 }
 0x1b3   :  { %459 = vsyncpa [#allocation4], 1 }
 0x1b4   :  { %461 = vsyncpa [#allocation4 + $0x1], 1 }

</bundles_post_ra>
